<compile_context>
chip_gen: v6e
topology: v6e:2x2x1
jax: 0.10.0
libtpu: 0.0.40
codegen_flags: <defaults>
</compile_context>

<pallas_src>
import functools

import jax
import jax.numpy as jnp
from jax.experimental import pallas as pl
from jax.experimental.pallas import tpu as pltpu


def _round_up(x, m):
    return ((x + m - 1) // m) * m


def _tpu_vmem_and_cores():
    """Best-effort (vmem_capacity_bytes, tensorcores_per_chip)."""
    vmem_cap = 64 << 20            # conservative default (v7x-sized)
    cores = 1
    try:
        info = pltpu.get_tpu_info()
        vmem_cap = int(getattr(info, "vmem_capacity_bytes", vmem_cap))
    except Exception:
        pass
    try:
        kind = jax.devices()[0].device_kind.lower()
    except Exception:
        kind = ""
    if "v7" in kind:
        cores = 2                  # v7x: 2 TensorCores per chip
    return vmem_cap, cores


def _ce_ls_kernel(x_ref, t_ref, o_ref, acc_ref, *, epsilon, num_classes,
                  inv_n, n_total, tb, c_padded, need_row_mask):
    """One (part, step) grid point: accumulate per-row partial losses."""
    p = pl.program_id(0)
    s = pl.program_id(1)
    n_steps = pl.num_programs(1)

    @pl.when(s == 0)
    def _():
        acc_ref[...] = jnp.zeros_like(acc_ref)

    x = x_ref[...].astype(jnp.float32)                      # (tb, Cp)
    t = t_ref[...]                                          # (tb, 1) int32
    cp = x.shape[-1]

    # class ids as a (1, Cp) iota; comparisons broadcast over rows.
    cls_idx = jax.lax.broadcasted_iota(jnp.int32, (1, cp), 1)

    # numerically stable log-sum-exp along the class (lane) axis
    m = jnp.max(x, axis=-1, keepdims=True)                  # (tb, 1)
    lse = jnp.log(jnp.sum(jnp.exp(x - m), axis=-1, keepdims=True)) + m

    # x[target] via select + lane reduce (scatter-free one-hot gather).
    # Padded batch rows carry a -1 sentinel target -> contribute 0 here.
    x_y = jnp.sum(jnp.where(cls_idx == t, x, 0.0), axis=-1, keepdims=True)

    if c_padded:
        # class axis lane-padded with a large negative fill: exp() underflows
        # to 0 so lse is exact; only sum_c(x) needs masking to real classes.
        sum_x = jnp.sum(jnp.where(cls_idx < num_classes, x, 0.0),
                        axis=-1, keepdims=True)
    else:
        sum_x = jnp.sum(x, axis=-1, keepdims=True)          # (tb, 1)

    # per-row loss: (1-eps)*(lse - x[y]) + eps*lse - (eps/C)*sum_c x
    row = ((1.0 - epsilon) * (lse - x_y) + epsilon * lse
           - (epsilon / num_classes) * sum_x)               # (tb, 1)

    if need_row_mask:
        # zero contributions of padded batch rows; (tb,1)-sized work only.
        row0 = (p * n_steps + s) * tb
        rows = row0 + jax.lax.broadcasted_iota(jnp.int32, (tb, 1), 0)
        row = jnp.where(rows < n_total, row, 0.0)

    # defer the sublane (batch) reduce: elementwise-accumulate per-row
    # partials; the single reduction happens once in the epilogue.
    acc_ref[...] += row

    @pl.when(s == n_steps - 1)
    def _():
        total = jnp.sum(acc_ref[...]) * inv_n
        lane = jax.lax.broadcasted_iota(jnp.int32, (1, 128), 1)
        # lane-dense 128-wide output slab; only lane 0 carries the partial.
        o_ref[...] = jnp.where(lane == 0, total, 0.0)


def cross_entropy_label_smooth(logits, targets, *, num_classes, epsilon,
                               tb=None, num_parts=None):
    """logits: (N, C) float; targets: (N,) int class ids. Returns scalar loss."""
    N, C = logits.shape
    assert C == num_classes
    dtype = logits.dtype
    assert jnp.issubdtype(dtype, jnp.floating)
    itemsize = jnp.dtype(dtype).itemsize

    vmem_cap, cores = _tpu_vmem_and_cores()

    # --- lane-dense class axis: pad tiny C up to one full vreg width --------
    Cp, pad_c = C, 0
    if C < 128:
        Cp = 128
        pad_c = Cp - C

    # --- batch-tile selection: size off the f32 working set, not input bytes
    sublane = 8 * max(1, 4 // itemsize)           # 8 f32 / 16 bf16 / 32 int8
    f32_block_cap = (8 << 20) if vmem_cap >= (100 << 20) else (4 << 20)
    if tb is None:
        tb = f32_block_cap // max(1, Cp * 4)
    tb = min(tb, _round_up(N, sublane))           # don't tile past the batch
    tb = max(sublane, (tb // sublane) * sublane)  # dtype-packed sublane align

    # --- grid: leading 'parallel' axis = one partial sum per TensorCore -----
    total_steps = pl.cdiv(N, tb)
    if num_parts is None:
        num_parts = cores if total_steps >= 2 * cores else 1
    num_parts = int(max(1, min(num_parts, total_steps)))
    steps = pl.cdiv(N, tb * num_parts)
    n_pad_rows = num_parts * steps * tb
    pad_n = n_pad_rows - N
    need_row_mask = pad_n != 0

    x = logits                                    # keep native dtype (bf16 moves bf16)
    t = targets.astype(jnp.int32).reshape(N, 1)
    if pad_n:
        x = jnp.pad(x, ((0, pad_n), (0, 0)))
        t = jnp.pad(t, ((0, pad_n), (0, 0)), constant_values=-1)   # sentinel
    if pad_c:
        fill = -1e30 if float(jnp.finfo(dtype).max) > 1e30 else float(jnp.finfo(dtype).min)
        x = jnp.pad(x, ((0, 0), (0, pad_c)), constant_values=fill)

    kernel = functools.partial(
        _ce_ls_kernel, epsilon=float(epsilon), num_classes=int(num_classes),
        inv_n=1.0 / float(N), n_total=N, tb=tb, c_padded=bool(pad_c),
        need_row_mask=need_row_mask)

    # scoped-VMEM budget: multi-buffered native-dtype input blocks plus ~4
    # f32-sized temporaries, clamped to 3/4 of this chip's physical VMEM.
    in_block = tb * Cp * itemsize
    f32_block = tb * Cp * 4
    vmem_limit = int(min(max(32 << 20, 3 * in_block + 4 * f32_block + (4 << 20)),
                         (vmem_cap * 3) // 4))

    partials = pl.pallas_call(
        kernel,
        out_shape=jax.ShapeDtypeStruct((1, 128 * num_parts), jnp.float32),
        grid_spec=pltpu.PrefetchScalarGridSpec(
            num_scalar_prefetch=0,
            grid=(num_parts, steps),
            in_specs=[
                pl.BlockSpec((tb, Cp), lambda p, s: (p * steps + s, 0)),
                pl.BlockSpec((tb, 1), lambda p, s: (p * steps + s, 0)),
            ],
            out_specs=pl.BlockSpec((1, 128), lambda p, s: (0, p)),
            scratch_shapes=[pltpu.VMEM((tb, 1), jnp.float32)],
        ),
        compiler_params=pltpu.CompilerParams(
            dimension_semantics=("parallel", "arbitrary"),
            vmem_limit_bytes=vmem_limit,
        ),
    )(x, t)
    # per-part partials (already /N) sit in lane 0 of each 128-lane slab;
    # the remaining lanes are zeros, so a plain sum yields the scalar loss.
    return jnp.sum(partials)


def _reference(logits, targets, num_classes, epsilon):
    log_probs = jax.nn.log_softmax(logits.astype(jnp.float32), axis=1)
    one_hot = jax.nn.one_hot(targets, num_classes, dtype=jnp.float32)
    tgt = (1.0 - epsilon) * one_hot + epsilon / num_classes
    return jnp.sum(jnp.mean(-tgt * log_probs, axis=0))


if __name__ == "__main__":
    EPS = 0.1
    key = jax.random.PRNGKey(0)
    k = jax.random.split(key, 10)

    # (1) f32, ragged batch (tail padding + row mask), C = one vreg of lanes
    n1, c1 = 20, 128
    x1 = jax.random.normal(k[0], (n1, c1), dtype=jnp.float32)
    t1 = jax.random.randint(k[1], (n1,), 0, c1, dtype=jnp.int32)
    loss1 = jax.block_until_ready(
        cross_entropy_label_smooth(x1, t1, num_classes=c1, epsilon=EPS))
    ref1 = _reference(x1, t1, c1, EPS)
    assert jnp.allclose(loss1, ref1, rtol=1e-5, atol=1e-5), (loss1, ref1)

    # (2) multi-step accumulation + explicit 2-part "parallel" axis + tail mask
    n2, c2 = 48, 128
    x2 = jax.random.normal(k[2], (n2, c2), dtype=jnp.float32)
    t2 = jax.random.randint(k[3], (n2,), 0, c2, dtype=jnp.int32)
    loss2 = jax.block_until_ready(
        cross_entropy_label_smooth(x2, t2, num_classes=c2, epsilon=EPS,
                                   tb=16, num_parts=2))
    ref2 = _reference(x2, t2, c2, EPS)
    assert jnp.allclose(loss2, ref2, rtol=1e-5, atol=1e-5), (loss2, ref2)

    # (3) bf16 logits moved as bf16 (half the HBM bytes), upcast in-kernel;
    #     batch tile auto-rounded to the bf16 sublane multiple (16)
    n3, c3 = 40, 256
    x3 = jax.random.normal(k[4], (n3, c3), dtype=jnp.float32).astype(jnp.bfloat16)
    t3 = jax.random.randint(k[5], (n3,), 0, c3, dtype=jnp.int32)
    loss3 = jax.block_until_ready(
        cross_entropy_label_smooth(x3, t3, num_classes=c3, epsilon=EPS))
    ref3 = _reference(x3, t3, c3, EPS)
    assert jnp.allclose(loss3, ref3, rtol=1e-5, atol=1e-5), (loss3, ref3)

    # (3b) bf16 multi-step path (16-row-aligned blocks across several steps)
    n3b, c3b = 48, 128
    x3b = jax.random.normal(k[6], (n3b, c3b), dtype=jnp.float32).astype(jnp.bfloat16)
    t3b = jax.random.randint(k[7], (n3b,), 0, c3b, dtype=jnp.int32)
    loss3b = jax.block_until_ready(
        cross_entropy_label_smooth(x3b, t3b, num_classes=c3b, epsilon=EPS, tb=16))
    ref3b = _reference(x3b, t3b, c3b, EPS)
    assert jnp.allclose(loss3b, ref3b, rtol=1e-5, atol=1e-5), (loss3b, ref3b)

    # (4) tiny class count (< 128): class axis lane-padded + masked smoothing
    n4, c4 = 24, 10
    x4 = jax.random.normal(k[8], (n4, c4), dtype=jnp.float32)
    t4 = jax.random.randint(k[9], (n4,), 0, c4, dtype=jnp.int32)
    loss4 = jax.block_until_ready(
        cross_entropy_label_smooth(x4, t4, num_classes=c4, epsilon=EPS))
    ref4 = _reference(x4, t4, c4, EPS)
    assert jnp.allclose(loss4, ref4, rtol=1e-5, atol=1e-5), (loss4, ref4)

    print("KERNEL_OK")
</pallas_src>

<mosaic_0001>
module attributes {stable_mosaic.version = 11 : i64} {
  func.func @_ce_ls_kernel(%arg0: i32, %arg1: i32, %arg2: memref<24x128xf32, #tpu.memory_space<vmem>>, %arg3: memref<24x1xi32, #tpu.memory_space<vmem>>, %arg4: memref<1x128xf32, #tpu.memory_space<vmem>>, %arg5: memref<24x1xf32, #tpu.memory_space<vmem>>) attributes {dimension_semantics = [#tpu.dimension_semantics<parallel>, #tpu.dimension_semantics<arbitrary>], iteration_bounds = array<i64: 1, 1>, scalar_prefetch = 0 : i64, scratch_operands = 1 : i64, tpu.core_type = #tpu.core_type<tc>, window_params = [{transform_indices = @transform_0, window_bounds = array<i64: 24, 128>}, {transform_indices = @transform_1, window_bounds = array<i64: 24, 1>}, {transform_indices = @transform_2, window_bounds = array<i64: 1, 128>}]} {
    %c0_i32 = arith.constant 0 : i32
    %0 = arith.cmpi eq, %arg1, %c0_i32 : i32
    %1 = arith.extui %0 : i1 to i32
    %c0_i32_0 = arith.constant 0 : i32
    %2 = arith.cmpi ne, %1, %c0_i32_0 : i32
    scf.if %2 {
      %cst_18 = arith.constant 0.000000e+00 : f32
      %49 = vector.broadcast %cst_18 : f32 to vector<24x1xf32>
      %c0_19 = arith.constant 0 : index
      %c0_20 = arith.constant 0 : index
      %50 = vector.load %arg5[%c0_19, %c0_20] : memref<24x1xf32, #tpu.memory_space<vmem>>, vector<24x1xf32>
      tpu.vector_store %arg5[%c0_19, %c0_20], %49 {strides = array<i32>} : memref<24x1xf32, #tpu.memory_space<vmem>>, vector<24x1xf32>,
    } else {
    }
    %c0 = arith.constant 0 : index
    %c0_1 = arith.constant 0 : index
    %3 = vector.load %arg2[%c0, %c0_1] : memref<24x128xf32, #tpu.memory_space<vmem>>, vector<24x128xf32>
    %c0_2 = arith.constant 0 : index
    %c0_3 = arith.constant 0 : index
    %4 = vector.load %arg3[%c0_2, %c0_3] : memref<24x1xi32, #tpu.memory_space<vmem>>, vector<24x1xi32>
    %5 = tpu.iota {dimensions = array<i32: 1>} : vector<1x128xi32>
    %cst = arith.constant dense<0xFF800000> : vector<24xf32>
    %6 = vector.multi_reduction <maximumf>, %3, %cst [1] : vector<24x128xf32> to vector<24xf32>
    %7 = vector.shape_cast %6 : vector<24xf32> to vector<24x1xf32>
    %8 = vector.broadcast %7 : vector<24x1xf32> to vector<24x128xf32>
    %9 = arith.subf %3, %8 : vector<24x128xf32>
    %10 = math.exp %9 : vector<24x128xf32>
    %cst_4 = arith.constant dense<0.000000e+00> : vector<24xf32>
    %11 = vector.multi_reduction <add>, %10, %cst_4 [1] : vector<24x128xf32> to vector<24xf32>
    %12 = vector.shape_cast %11 : vector<24xf32> to vector<24x1xf32>
    %13 = math.log %12 : vector<24x1xf32>
    %14 = arith.addf %13, %7 : vector<24x1xf32>
    %15 = vector.broadcast %5 : vector<1x128xi32> to vector<24x128xi32>
    %16 = vector.broadcast %4 : vector<24x1xi32> to vector<24x128xi32>
    %17 = arith.cmpi eq, %15, %16 : vector<24x128xi32>
    %cst_5 = arith.constant 0.000000e+00 : f32
    %18 = vector.broadcast %cst_5 : f32 to vector<24x128xf32>
    %19 = arith.select %17, %3, %18 : vector<24x128xi1>, vector<24x128xf32>
    %cst_6 = arith.constant dense<0.000000e+00> : vector<24xf32>
    %20 = vector.multi_reduction <add>, %19, %cst_6 [1] : vector<24x128xf32> to vector<24xf32>
    %21 = vector.shape_cast %20 : vector<24xf32> to vector<24x1xf32>
    %cst_7 = arith.constant dense<0.000000e+00> : vector<24xf32>
    %22 = vector.multi_reduction <add>, %3, %cst_7 [1] : vector<24x128xf32> to vector<24xf32>
    %23 = vector.shape_cast %22 : vector<24xf32> to vector<24x1xf32>
    %24 = arith.subf %14, %21 : vector<24x1xf32>
    %cst_8 = arith.constant 0.899999976 : f32
    %25 = vector.broadcast %cst_8 : f32 to vector<24x1xf32>
    %26 = arith.mulf %25, %24 : vector<24x1xf32>
    %cst_9 = arith.constant 1.000000e-01 : f32
    %27 = vector.broadcast %cst_9 : f32 to vector<24x1xf32>
    %28 = arith.mulf %27, %14 : vector<24x1xf32>
    %29 = arith.addf %26, %28 : vector<24x1xf32>
    %cst_10 = arith.constant 7.812500e-04 : f32
    %30 = vector.broadcast %cst_10 : f32 to vector<24x1xf32>
    %31 = arith.mulf %30, %23 : vector<24x1xf32>
    %32 = arith.subf %29, %31 : vector<24x1xf32>
    %c1_i32 = arith.constant 1 : i32
    %33 = arith.muli %arg0, %c1_i32 : i32
    %34 = arith.addi %33, %arg1 : i32
    %c24_i32 = arith.constant 24 : i32
    %35 = arith.muli %34, %c24_i32 : i32
    %36 = tpu.iota {dimensions = array<i32: 0>} : vector<24x1xi32>
    %37 = vector.broadcast %35 : i32 to vector<24x1xi32>
    %38 = arith.addi %37, %36 : vector<24x1xi32>
    %c20_i32 = arith.constant 20 : i32
    %39 = vector.broadcast %c20_i32 : i32 to vector<24x1xi32>
    %40 = arith.cmpi slt, %38, %39 : vector<24x1xi32>
    %cst_11 = arith.constant 0.000000e+00 : f32
    %41 = vector.broadcast %cst_11 : f32 to vector<24x1xf32>
    %42 = arith.select %40, %32, %41 : vector<24x1xi1>, vector<24x1xf32>
    %c0_12 = arith.constant 0 : index
    %c0_13 = arith.constant 0 : index
    %43 = vector.load %arg5[%c0_12, %c0_13] : memref<24x1xf32, #tpu.memory_space<vmem>>, vector<24x1xf32>
    %44 = arith.addf %43, %42 : vector<24x1xf32>
    %c0_14 = arith.constant 0 : index
    %c0_15 = arith.constant 0 : index
    %45 = vector.load %arg5[%c0_14, %c0_15] : memref<24x1xf32, #tpu.memory_space<vmem>>, vector<24x1xf32>
    tpu.vector_store %arg5[%c0_14, %c0_15], %44 {strides = array<i32>} : memref<24x1xf32, #tpu.memory_space<vmem>>, vector<24x1xf32>,
    %c0_i32_16 = arith.constant 0 : i32
    %46 = arith.cmpi eq, %arg1, %c0_i32_16 : i32
    %47 = arith.extui %46 : i1 to i32
    %c0_i32_17 = arith.constant 0 : i32
    %48 = arith.cmpi ne, %47, %c0_i32_17 : i32
    scf.if %48 {
      %c0_18 = arith.constant 0 : index
      %c0_19 = arith.constant 0 : index
      %49 = vector.load %arg5[%c0_18, %c0_19] : memref<24x1xf32, #tpu.memory_space<vmem>>, vector<24x1xf32>
      %50 = vector.shape_cast %49 : vector<24x1xf32> to vector<1x24x1xf32>
      %cst_20 = arith.constant dense<0.000000e+00> : vector<1xf32>
      %51 = vector.multi_reduction <add>, %50, %cst_20 [1, 2] : vector<1x24x1xf32> to vector<1xf32>
      %52 = vector.shape_cast %51 : vector<1xf32> to vector<1x1x1xf32>
      %53 = vector.extract %52[0, 0, 0] : f32 from vector<1x1x1xf32>
      %cst_21 = arith.constant 5.000000e-02 : f32
      %54 = arith.mulf %53, %cst_21 : f32
      %55 = tpu.iota {dimensions = array<i32: 1>} : vector<1x128xi32>
      %c0_i32_22 = arith.constant 0 : i32
      %56 = vector.broadcast %c0_i32_22 : i32 to vector<1x128xi32>
      %57 = arith.cmpi eq, %55, %56 : vector<1x128xi32>
      %cst_23 = arith.constant 0.000000e+00 : f32
      %58 = vector.broadcast %54 : f32 to vector<1x128xf32>
      %59 = vector.broadcast %cst_23 : f32 to vector<1x128xf32>
      %60 = arith.select %57, %58, %59 : vector<1x128xi1>, vector<1x128xf32>
      %c0_24 = arith.constant 0 : index
      %c0_25 = arith.constant 0 : index
      %61 = vector.load %arg4[%c0_24, %c0_25] : memref<1x128xf32, #tpu.memory_space<vmem>>, vector<1x128xf32>
      tpu.vector_store %arg4[%c0_24, %c0_25], %60 {strides = array<i32>} : memref<1x128xf32, #tpu.memory_space<vmem>>, vector<1x128xf32>,
    } else {
    }
    return
  }
  func.func @transform_0(%arg0: i32, %arg1: i32) -> (i32, i32) {
    %c1_i32 = arith.constant 1 : i32
    %0 = arith.muli %arg0, %c1_i32 : i32
    %1 = arith.addi %0, %arg1 : i32
    %c0_i32 = arith.constant 0 : i32
    %c0_i32_0 = arith.constant 0 : i32
    return %1, %c0_i32 : i32, i32
  }
  func.func @transform_1(%arg0: i32, %arg1: i32) -> (i32, i32) {
    %c1_i32 = arith.constant 1 : i32
    %0 = arith.muli %arg0, %c1_i32 : i32
    %1 = arith.addi %0, %arg1 : i32
    %c0_i32 = arith.constant 0 : i32
    %c0_i32_0 = arith.constant 0 : i32
    return %1, %c0_i32 : i32, i32
  }
  func.func @transform_2(%arg0: i32, %arg1: i32) -> (i32, i32) {
    %c0_i32 = arith.constant 0 : i32
    %c0_i32_0 = arith.constant 0 : i32
    return %c0_i32, %arg0 : i32, i32
  }
}

</mosaic_0001>

<bundles_post_ra>
// kernel: tpu_custom_call.1
= control target key start
LH: loop header
LB: loop body
LE: loop exit
PB: predicated region body
PF: predicated region fallthrough
CT: control target
= control target key end

     0   :  { %v265_v3 = vmov 0   ;;  %s319_s0 = inlined_call_operand.vmem [shape: f32[24,128], index: 0, kind: input, shape index: {}]   ;;  %s320_s1 = inlined_call_operand.vmem [shape: s32[24,1], index: 1, kind: input, shape index: {}]   ;;  %s321_s2 = inlined_call_operand.hbm [shape: f32[1,128], index: 2, kind: output, shape index: {}]  }
   0x1   :  { %v64_v0 = vld [vmem:[%s319_s0] sm:$0xff]  ;;  %v66_v1 = vld [vmem:[%s319_s0 + $0x10] sm:$0xff]  ;;  %v65_v2 = vld [vmem:[%s319_s0 + $0x8] sm:$0xff]  ;;  %229 = vset.pattern.permute.xlu1 %v265_v3  ;;  %230 = vset.pattern.permute.xlu0 %v265_v3 }
   0x2   :  { %72 = vmax.xlane.f32.xlu0 %v64_v0  ;;  %76 = vmax.xlane.f32.xlu1 %v66_v1 }
   0x3   :  { %7 = vsyncpa [#allocation4], 0  ;;  %v67_v4 = vld [vmem:[%s320_s1] sm:$0xff]  ;;  %v69_v5 = vld [vmem:[%s320_s1 + $0x10] sm:$0xff]  ;;  %v70_v16 = vlaneseq  ;;  %vm60_vm3 = vcmask 7168   ;;  %v266_v27 = vmov 0.0  }
   0x4   :  { %v68_v6 = vld [vmem:[%s320_s1 + $0x8] sm:$0xff]  ;;  %61 = vst.msk [vmem:[#allocation2] sm:$0xff] %vm60_vm3, %v266_v27  ;;  %62 = vst.msk [vmem:[#allocation2 + $0x8] sm:$0xff] %vm60_vm3, %v266_v27  ;;  %s267_s1 = smov [#allocation3]  }
   0x5   :  { %v301_v17 = vand.u32 127, %v70_v16  ;;  %63 = vst.msk [vmem:[#allocation2 + $0x10] sm:$0xff] %vm60_vm3, %v266_v27  ;;  %v150_v43 = vshrl.u32 %v70_v16, 7  ;;  %s204_s21 = sshll.u32 %s267_s1, 4  ;;  %s205_s21 = int_to_ptr.vmem [resolvable:$true] %s204_s21 }
   0x6   :  { %74 = vmax.xlane.f32.xlu0 %v65_v2  ;;  %s243_s23 = scalar_lea.vmem %s205_s21, 16  ;;  %s247_s24 = scalar_lea.vmem %s205_s21, 32 }
   0x7   :  { %v152_v54 = vadd.s32 16, %v150_v43  ;;  %vm194_vm5 = vcmp.eq.s32.totalorder %v301_v17, 0  ;;  %p244_p0 = scmp.ne.s32.totalorder %s205_s21, %s243_s23  ;;  %p248_p1 = scmp.lt.s32.totalorder %s205_s21, %s205_s21 }
   0x8   :  { %p249_p2 = scmp.lt.s32.totalorder %s247_s24, %s243_s23 }
   0x9   :  { %vm159_vm4 = vcmp.lt.s32.totalorder %v152_v54, 20 }
   0xa   :  { %p250_p3 = por %p249_p2, %p248_p1 }
   0xb   :  { %v163_v53 = vld [vmem:[#allocation2] sm:$0xff] }
   0xc   :  { %v165_v3 = vld [vmem:[#allocation2 + $0x10] sm:$0xff]  ;;  %p251_p4 = pnand %p250_p3, %p244_p0 }
  0x13   :  { %103 = vperm.xlu1 %229, %v67_v4   ;;  %v164_v4 = vld [vmem:[#allocation2 + $0x8] sm:$0xff] }
  0x17   :  { %109 = vperm.xlu1 %229, %v69_v5  }
  0x1c   :  { %106 = vperm.xlu0 %230, %v68_v6  }
  0x8b   :  { %v73_v7 = vpop.xlane.xlu0 %72  ;;  %v77_v8 = vpop.xlane.xlu1 %76 }
  0x8c   :  { %v78_v9 = vsub.f32 %v64_v0, %v73_v7  ;;  %v80_v10 = vsub.f32 %v66_v1, %v77_v8 }
  0x8e   :  { %v81_v11 = vmul.f32 1.442695, %v78_v9  ;;  %v85_v12 = vmul.f32 1.442695, %v80_v10 }
  0x8f   :  { %v75_v13 = vpop.xlane.xlu0 %74  ;;  %v104_v20 = vpop.permute.xlu1 %103 }
  0x90   :  { %231 = vpow2.f32 %v81_v11  ;;  %v79_v14 = vsub.f32 %v65_v2, %v75_v13  ;;  %vm111_vm0 = vcmp.eq.s32.totalorder %v301_v17, %v104_v20 }
  0x91   :  { %233 = vpow2.f32 %v85_v12  ;;  %v114_v23 = vsel %vm111_vm0, %v64_v0, 0.0 }
  0x92   :  { %v83_v15 = vmul.f32 1.442695, %v79_v14 }
  0x93   :  { %v110_v24 = vpop.permute.xlu1 %109 }
  0x94   :  { %235 = vpow2.f32 %v83_v15  ;;  %vm113_vm2 = vcmp.eq.s32.totalorder %v301_v17, %v110_v24 }
  0x95   :  { %v116_v26 = vsel %vm113_vm2, %v66_v1, 0.0 }
  0x97   :  { %v107_v22 = vpop.permute.xlu0 %106 }
  0x98   :  { %vm112_vm1 = vcmp.eq.s32.totalorder %v301_v17, %v107_v22 }
  0x99   :  { %v115_v25 = vsel %vm112_vm1, %v65_v2, 0.0 }
  0x9d   :  { %v232_v18 = vpop.eup %231 }
  0x9e   :  { %87 = vadd.xlane.f32.xlu1 %v232_v18  ;;  %v234_v19 = vpop.eup %233 }
  0xa1   :  { %v236_v21 = vpop.eup %235 }
  0xa2   :  { %91 = vadd.xlane.f32.xlu1 %v234_v19  ;;  %89 = vadd.xlane.f32.xlu0 %v236_v21 }
  0xa6   :  { %117 = vadd.xlane.f32.xlu1 %v114_v23  ;;  %127 = vadd.xlane.f32.xlu0 %v66_v1 }
  0xaa   :  { %119 = vadd.xlane.f32.xlu1 %v115_v25 }
  0xae   :  { %121 = vadd.xlane.f32.xlu1 %v116_v26 }
  0xb2   :  { %123 = vadd.xlane.f32.xlu1 %v64_v0 }
  0xb6   :  { %125 = vadd.xlane.f32.xlu1 %v65_v2 }
 0x127   :  { %v88_v28 = vpop.xlane.xlu1 %87 }
 0x128   :  { %237 = vlog2.f32 %v88_v28 }
 0x12b   :  { %v92_v29 = vpop.xlane.xlu1 %91  ;;  %v90_v30 = vpop.xlane.xlu0 %89 }
 0x12c   :  { %239 = vlog2.f32 %v92_v29 }
 0x12d   :  { %241 = vlog2.f32 %v90_v30 }
 0x12f   :  { %v118_v31 = vpop.xlane.xlu1 %117  ;;  %v128_v49 = vpop.xlane.xlu0 %127 }
 0x130   :  { %v143_v59 = vmul.f32 0.00078125, %v128_v49 }
 0x133   :  { %v120_v32 = vpop.xlane.xlu1 %119 }
 0x135   :  { %v238_v33 = vpop.eup %237 }
 0x136   :  { %v94_v34 = vmul.f32 0.6931472, %v238_v33 }
 0x137   :  { %v122_v35 = vpop.xlane.xlu1 %121 }
 0x138   :  { %v99_v36 = vadd.f32 %v94_v34, %v73_v7 }
 0x139   :  { %v240_v37 = vpop.eup %239 }
 0x13a   :  { %v242_v38 = vpop.eup %241  ;;  %v98_v39 = vmul.f32 0.6931472, %v240_v37  ;;  %v129_v40 = vsub.f32 %v99_v36, %v118_v31  ;;  %v135_v44 = vmul.f32 0.1, %v99_v36 }
 0x13b   :  { %v96_v41 = vmul.f32 0.6931472, %v242_v38  ;;  %v124_v42 = vpop.xlane.xlu1 %123 }
 0x13c   :  { %v132_v45 = vmul.f32 0.9, %v129_v40  ;;  %v101_v46 = vadd.f32 %v98_v39, %v77_v8  ;;  %v141_v47 = vmul.f32 0.00078125, %v124_v42 }
 0x13d   :  { %v100_v48 = vadd.f32 %v96_v41, %v75_v13 }
 0x13e   :  { %v138_v50 = vadd.f32 %v135_v44, %v132_v45  ;;  %v131_v51 = vsub.f32 %v101_v46, %v122_v35  ;;  %v137_v56 = vmul.f32 0.1, %v101_v46 }
 0x13f   :  { %v130_v52 = vsub.f32 %v100_v48, %v120_v32  ;;  %v126_v55 = vpop.xlane.xlu1 %125  ;;  %v136_v60 = vmul.f32 0.1, %v100_v48 }
 0x140   :  { %v134_v57 = vmul.f32 0.9, %v131_v51  ;;  %v144_v58 = vsub.f32 %v138_v50, %v141_v47  ;;  %v142_v62 = vmul.f32 0.00078125, %v126_v55 }
 0x141   :  { %v133_v61 = vmul.f32 0.9, %v130_v52 }
 0x142   :  { %v140_v63 = vadd.f32 %v137_v56, %v134_v57  ;;  %v166_v0 = vadd.f32 %v163_v53, %v144_v58 }
 0x143   :  { %v139_v1 = vadd.f32 %v136_v60, %v133_v61 }
 0x144   :  { %170 = vst.msk [vmem:[#allocation2] sm:$0xff] %vm60_vm3, %v166_v0  ;;  %v146_v2 = vsub.f32 %v140_v63, %v143_v59 }
 0x145   :  { %v145_v5 = vsub.f32 %v139_v1, %v142_v62 }
 0x146   :  { %v162_v6 = vsel %vm159_vm4, %v146_v2, 0.0 }
 0x147   :  { %v168_v7 = vadd.f32 %v165_v3, %v162_v6  ;;  %v167_v8 = vadd.f32 %v164_v4, %v145_v5 }
 0x149   :  { %172 = vst.msk [vmem:[#allocation2 + $0x10] sm:$0xff] %vm60_vm3, %v168_v7  ;;  %171 = vst.msk [vmem:[#allocation2 + $0x8] sm:$0xff] %vm60_vm3, %v167_v8 }
 0x14b   :  { %v176_v9 = vld [vmem:[#allocation2] sm:$0xff] }
 0x14c   :  { %v179_v12 = vsel %vm60_vm3, %v176_v9, 0.0 }
 0x150   :  { %v177_v10 = vld [vmem:[#allocation2 + $0x8] sm:$0xff]  ;;  %v178_v11 = vld [vmem:[#allocation2 + $0x10] sm:$0xff] }
 0x151   :  { %v180_v13 = vsel %vm60_vm3, %v177_v10, 0.0  ;;  %v182_v14 = vsel %vm60_vm3, %v178_v11, 0.0 }
 0x152   :  { %v181_v15 = vadd.f32 %v180_v13, %v179_v12 }
 0x154   :  { %v183_v16 = vadd.f32 %v182_v14, %v181_v15 }
 0x156   :  { %184 = vadd.xlane.f32.xlu1 %v183_v16 }
 0x1df   :  { %v185_v18 = vpop.xlane.xlu1 %184 }
 0x1e0   :  { %v186_v19 = vrot.slane %v185_v18, 4 }
 0x1e2   :  { %v187_v20 = vadd.f32 %v186_v19, %v185_v18 }
 0x1e4   :  { %v188_v21 = vrot.slane %v187_v20, 2 }
 0x1e6   :  { %v189_v22 = vadd.f32 %v188_v21, %v187_v20 }
 0x1e8   :  { %v190_v23 = vrot.slane %v189_v22, 1 }
 0x1ea   :  { %v191_v24 = vadd.f32 %v190_v23, %v189_v22 }
 0x1ec   :  { %224 = vpush %v191_v24 }
 0x21d   :  { %s225_s0 = spop %224 }
 0x21e   :  { %s193_s22 = smul.f32 0.05, %s225_s0 }
 0x220   :  { %v195_v25 = vstv %s193_s22 }
 0x221   :  { %v196_v26 = vsel %vm194_vm5, %v195_v25, 0.0 }
 0x222   :  { %197 = vst [vmem:[#allocation3] sm:$0x1] %v196_v26 }
 0x223   :  { %254 = shalt.err (!%p251_p4)
}
 0x224   :  { %207 = dma.vmem_to_hbm [thread:$0]  %s205_s21, 16, %s321_s2, [#allocation4]  }
 0x225   :  { %263 = dma.done.wait [#allocation4], 16  }
 0x226   :  { %264 = vsyncadd [#allocation4], 4294967280 }
 0x227   :  { %211 = vsyncpa [#allocation4], 1 }

</bundles_post_ra>
